<compile_context>
chip_gen: v7x
topology: tpu7x:2x2x1
jax: 0.10.0
libtpu: 0.0.40
codegen_flags: <defaults>
</compile_context>

<pallas_src>
import math
from functools import partial

import jax
import jax.numpy as jnp
from jax.experimental import pallas as pl
from jax.experimental.pallas import tpu as pltpu


def _flip_symmetric_kernel(W, sel_ref, x_ref, o_ref):
    # x_ref / o_ref: (block_r, C) lane-dense tiles; C % W == 0, so each group
    # of W consecutive lanes is a complete flip group.
    # sel_ref: (1, C) int32, sel[c] = c % W (lane phase within its group).
    x = x_ref[...]
    sel = jnp.broadcast_to(sel_ref[...], x.shape)      # hoisted: one sublane bcast
    C = x.shape[-1]

    flipped = x                                        # phase with shift 0 keeps x
    for j in range(W):                                 # static unroll, W is tiny
        shift = 2 * j - (W - 1)                        # out[l] = x[l - shift] for phase j
        if shift == 0:
            continue
        rolled = pltpu.roll(x, shift=shift % C, axis=1)   # XLU lane rotate
        flipped = jnp.where(sel == j, rolled, flipped)    # VPU select

    o_ref[...] = ((x + flipped) * 0.5).astype(o_ref.dtype)


@jax.jit
def _flip_symmetric_pallas(kernel):
    shape = kernel.shape
    dtype = kernel.dtype
    W = shape[-1]
    N = math.prod(shape)
    itemsize = jnp.dtype(dtype).itemsize

    # Lane row length: multiple of 128 (lane-dense, unmasked vst) and of W
    # (groups never straddle a row).
    C = (128 * W) // math.gcd(128, W)
    R = pl.cdiv(N, C)
    Npad = R * C

    x = kernel.reshape(-1)                 # zero-copy flatten of contiguous weights
    if Npad != N:
        x = jnp.pad(x, (0, Npad - N))      # rare: only when O*I*kH not 128-aligned
    x2d = x.reshape(R, C)

    # ~2 MiB per pipeline buffer; rows multiple of 8 (sublane tile) or full extent.
    max_rows = max(8, (2 * 1024 * 1024 // (C * itemsize)) // 8 * 8)
    block_r = R if R <= max_rows else max_rows
    n_blocks = pl.cdiv(R, block_r)

    sel = (jnp.arange(C, dtype=jnp.int32) % W).reshape(1, C)   # lane phase pattern

    out2d = pl.pallas_call(
        partial(_flip_symmetric_kernel, W),
        out_shape=jax.ShapeDtypeStruct((R, C), dtype),
        grid=(n_blocks,),
        in_specs=[
            pl.BlockSpec((1, C), lambda i: (0, 0)),            # resident, fetched once
            pl.BlockSpec((block_r, C), lambda i: (i, 0)),
        ],
        out_specs=pl.BlockSpec((block_r, C), lambda i: (i, 0)),
        compiler_params=pltpu.CompilerParams(
            dimension_semantics=("parallel",),
            vmem_limit_bytes=32 * 1024 * 1024,
        ),
    )(sel, x2d)

    out = out2d.reshape(-1)
    if Npad != N:
        out = out[:N]
    return out.reshape(shape)


# Below this many elements, pallas_call dispatch + DMA setup dwarfs the work.
_PALLAS_MIN_ELEMS = 4096


def flip_symmetric(kernel, *, force_pallas=False):
    """0.5 * (kernel + flip(kernel, axis=-1)); Pallas path for large weight banks."""
    W = kernel.shape[-1]
    if W <= 1:
        return kernel                      # 0.5 * (x + x) == x exactly
    n_elems = math.prod(kernel.shape)
    if not force_pallas and n_elems < _PALLAS_MIN_ELEMS:
        # XLA fast path: tiny conv kernels — launch overhead would dominate.
        return 0.5 * (kernel + jnp.flip(kernel, axis=-1))
    return _flip_symmetric_pallas(kernel)


if __name__ == "__main__":
    key = jax.random.PRNGKey(0)
    ks = jax.random.split(key, 6)

    def ref(k):
        return 0.5 * (k + jnp.flip(k, axis=-1))

    # 1) Typical conv bank (32, 32, 3, 3): aligned zero-copy path, single block.
    w1 = jax.random.normal(ks[0], (32, 32, 3, 3), dtype=jnp.float32)
    o1 = jax.block_until_ready(flip_symmetric(w1))
    assert o1.shape == w1.shape and o1.dtype == w1.dtype
    assert jnp.allclose(o1, ref(w1), atol=1e-6, rtol=1e-6)

    # 2) Tiny weights (4, 4, 3, 3): XLA fast path.
    w2 = jax.random.normal(ks[1], (4, 4, 3, 3), dtype=jnp.float32)
    o2 = jax.block_until_ready(flip_symmetric(w2))
    assert jnp.allclose(o2, ref(w2), atol=1e-6, rtol=1e-6)

    # 3) Even kW + non-128-aligned total size: exercises pad/unpad path.
    w3 = jax.random.normal(ks[2], (6, 5, 3, 4), dtype=jnp.float32)
    o3 = jax.block_until_ready(flip_symmetric(w3, force_pallas=True))
    assert jnp.allclose(o3, ref(w3), atol=1e-6, rtol=1e-6)

    # 4) kW = 5 (two roll pairs + identity center), aligned path.
    w4 = jax.random.normal(ks[3], (16, 16, 5, 5), dtype=jnp.float32)
    o4 = jax.block_until_ready(flip_symmetric(w4, force_pallas=True))
    assert jnp.allclose(o4, ref(w4), atol=1e-6, rtol=1e-6)

    # 5) bf16 weights stay bf16 through the kernel (native-dtype VPU path).
    w5 = jax.random.normal(ks[4], (8, 8, 3, 3), dtype=jnp.bfloat16)
    o5 = jax.block_until_ready(flip_symmetric(w5, force_pallas=True))
    assert o5.dtype == jnp.bfloat16
    assert jnp.allclose(o5.astype(jnp.float32),
                        ref(w5.astype(jnp.float32)), atol=1e-2, rtol=1e-2)

    # 6) Larger bank (256, 256, 3, 3): multi-block grid with a partial boundary block.
    w6 = jax.random.normal(ks[5], (256, 256, 3, 3), dtype=jnp.float32)
    o6 = jax.block_until_ready(flip_symmetric(w6))
    assert jnp.allclose(o6, ref(w6), atol=1e-6, rtol=1e-6)

    print("KERNEL_OK")
</pallas_src>

<mosaic_0001>
module attributes {stable_mosaic.version = 11 : i64} {
  func.func @_flip_symmetric_kernel(%arg0: i32, %arg1: memref<1x384xi32, #tpu.memory_space<vmem>>, %arg2: memref<24x384xf32, #tpu.memory_space<vmem>>, %arg3: memref<24x384xf32, #tpu.memory_space<vmem>>) attributes {dimension_semantics = [#tpu.dimension_semantics<parallel>], iteration_bounds = array<i64: 1>, scalar_prefetch = 0 : i64, scratch_operands = 0 : i64, tpu.core_type = #tpu.core_type<tc>, window_params = [{pipeline_mode = #tpu.pipeline_mode<synchronous>, transform_indices = @transform_0, window_bounds = array<i64: 1, 384>}, {transform_indices = @transform_1, window_bounds = array<i64: 24, 384>}, {transform_indices = @transform_2, window_bounds = array<i64: 24, 384>}]} {
    %c0 = arith.constant 0 : index
    %c0_0 = arith.constant 0 : index
    %0 = vector.load %arg2[%c0, %c0_0] : memref<24x384xf32, #tpu.memory_space<vmem>>, vector<24x384xf32>
    %c0_1 = arith.constant 0 : index
    %c0_2 = arith.constant 0 : index
    %1 = vector.load %arg1[%c0_1, %c0_2] : memref<1x384xi32, #tpu.memory_space<vmem>>, vector<1x384xi32>
    %2 = vector.shape_cast %1 : vector<1x384xi32> to vector<1x384xi32>
    %3 = vector.broadcast %2 : vector<1x384xi32> to vector<24x384xi32>
    %c382_i32 = arith.constant 382 : i32
    %4 = tpu.dynamic_rotate %0 by %c382_i32 dim 1 : vector<24x384xf32>, i32 -> vector<24x384xf32>
    %c0_i32 = arith.constant 0 : i32
    %5 = vector.broadcast %c0_i32 : i32 to vector<24x384xi32>
    %6 = arith.cmpi eq, %3, %5 : vector<24x384xi32>
    %7 = arith.select %6, %4, %0 : vector<24x384xi1>, vector<24x384xf32>
    %c2_i32 = arith.constant 2 : i32
    %8 = tpu.dynamic_rotate %0 by %c2_i32 dim 1 : vector<24x384xf32>, i32 -> vector<24x384xf32>
    %c2_i32_3 = arith.constant 2 : i32
    %9 = vector.broadcast %c2_i32_3 : i32 to vector<24x384xi32>
    %10 = arith.cmpi eq, %3, %9 : vector<24x384xi32>
    %11 = arith.select %10, %8, %7 : vector<24x384xi1>, vector<24x384xf32>
    %12 = arith.addf %0, %11 : vector<24x384xf32>
    %cst = arith.constant 5.000000e-01 : f32
    %13 = vector.broadcast %cst : f32 to vector<24x384xf32>
    %14 = arith.mulf %12, %13 : vector<24x384xf32>
    %c0_4 = arith.constant 0 : index
    %c0_5 = arith.constant 0 : index
    %15 = vector.load %arg3[%c0_4, %c0_5] : memref<24x384xf32, #tpu.memory_space<vmem>>, vector<24x384xf32>
    tpu.vector_store %arg3[%c0_4, %c0_5], %14 {strides = array<i32>} : memref<24x384xf32, #tpu.memory_space<vmem>>, vector<24x384xf32>,
    return
  }
  func.func @transform_0(%arg0: i32) -> (i32, i32) {
    %c0_i32 = arith.constant 0 : i32
    %c0_i32_0 = arith.constant 0 : i32
    %c0_i32_1 = arith.constant 0 : i32
    return %c0_i32, %c0_i32_0 : i32, i32
  }
  func.func @transform_1(%arg0: i32) -> (i32, i32) {
    %c0_i32 = arith.constant 0 : i32
    %c0_i32_0 = arith.constant 0 : i32
    return %arg0, %c0_i32 : i32, i32
  }
  func.func @transform_2(%arg0: i32) -> (i32, i32) {
    %c0_i32 = arith.constant 0 : i32
    %c0_i32_0 = arith.constant 0 : i32
    return %arg0, %c0_i32 : i32, i32
  }
}

</mosaic_0001>

<bundles_post_ra>
// kernel: _flip_symmetric_pallas.1
= control target key start
LH: loop header
LB: loop body
LE: loop exit
PB: predicated region body
PF: predicated region fallthrough
CT: control target
= control target key end

     0   :  { %s148_s13 = smov 126   ;;  %s149_s28 = smov 2   ;;  %v21_v13 = vlaneseq  ;;  %s358_s1 = inlined_call_operand.vmem [shape: f32[24,384], index: 1, kind: input, shape index: {}]   ;;  %s359_s0 = inlined_call_operand.vmem [shape: s32[1,384], index: 0, kind: input, shape index: {}]   ;;  %s360_s2 = inlined_call_operand.vmem [shape: f32[24,384], index: 2, kind: output, shape index: {}]  }
   0x1   :  { %v168_v0 = vld [vmem:[%s358_s1 + $0x30] sm:$0xff]  ;;  %v173_v1 = vld [vmem:[%s358_s1] sm:$0xff]  ;;  %v180_v2 = vld [vmem:[%s358_s1 + $0x8] sm:$0xff] }
   0x2   :  { %37 = vrot.lane.b32.xlu1 %v168_v0, %s148_s13  ;;  %33 = vrot.lane.b32.xlu0 %v173_v1, %s148_s13  ;;  %v185_v3 = vld [vmem:[%s358_s1 + $0x18] sm:$0xff]  ;;  %v197_v5 = vld [vmem:[%s358_s1 + $0x20] sm:$0xff]  ;;  %v22_v16 = vshrl.u32 %v21_v13, 7  ;;  %v228_v21 = vand.u32 127, %v21_v13 }
   0x3   :  { %v192_v4 = vld [vmem:[%s358_s1 + $0x38] sm:$0xff]  ;;  %v204_v6 = vld [vmem:[%s358_s1 + $0x28] sm:$0xff]  ;;  %v209_v7 = vld [vmem:[%s358_s1 + $0x10] sm:$0xff] }
   0x4   :  { %v216_v8 = vld [vmem:[%s358_s1 + $0x40] sm:$0xff]  ;;  %v27_v19 = vsub.s32 1, %v22_v16  ;;  %v23_v20 = vsub.s32 0, %v22_v16  ;;  %v31_v23 = vsub.s32 2, %v22_v16  ;;  %vm53_vm0 = vcmp.lt.s32.totalorder %v228_v21, 126 }
   0x5   :  { %v20_v22 = vld [vmem:[%s359_s0] sm:$0x7]  ;;  %vm93_vm1 = vcmp.lt.s32.totalorder %v228_v21, 2 }
   0x6   :  { %39 = vrot.lane.b32.xlu1 %v180_v2, %s148_s13  ;;  %35 = vrot.lane.b32.xlu0 %v185_v3, %s148_s13  ;;  %v28_v26 = vrot.slane %v20_v22, %v27_v19  ;;  %v233_v27 = vrot.slane %v20_v22, %v23_v20  ;;  %v236_v28 = vrot.slane %v20_v22, %v31_v23 }
   0x8   :  { %vm64_vm2 = vcmp.eq.s32.totalorder %v28_v26, 0  ;;  %vm63_vm3 = vcmp.eq.s32.totalorder %v233_v27, 0  ;;  %vm104_vm4 = vcmp.eq.s32.totalorder %v28_v26, 2  ;;  %vm65_vm5 = vcmp.eq.s32.totalorder %v236_v28, 0 }
   0x9   :  { %vm103_vm6 = vcmp.eq.s32.totalorder %v233_v27, 2  ;;  %vm105_vm7 = vcmp.eq.s32.totalorder %v236_v28, 2 }
   0xa   :  { %43 = vrot.lane.b32.xlu1 %v192_v4, %s148_s13  ;;  %41 = vrot.lane.b32.xlu0 %v197_v5, %s148_s13 }
   0xe   :  { %47 = vrot.lane.b32.xlu1 %v204_v6, %s148_s13  ;;  %45 = vrot.lane.b32.xlu0 %v209_v7, %s148_s13 }
  0x12   :  { %75 = vrot.lane.b32.xlu1 %v173_v1, %s149_s28  ;;  %49 = vrot.lane.b32.xlu0 %v216_v8, %s148_s13 }
  0x16   :  { %79 = vrot.lane.b32.xlu1 %v168_v0, %s149_s28  ;;  %77 = vrot.lane.b32.xlu0 %v185_v3, %s149_s28 }
  0x1a   :  { %83 = vrot.lane.b32.xlu1 %v197_v5, %s149_s28  ;;  %81 = vrot.lane.b32.xlu0 %v180_v2, %s149_s28 }
  0x1e   :  { %87 = vrot.lane.b32.xlu1 %v209_v7, %s149_s28  ;;  %85 = vrot.lane.b32.xlu0 %v192_v4, %s149_s28 }
  0x22   :  { %91 = vrot.lane.b32.xlu1 %v216_v8, %s149_s28  ;;  %89 = vrot.lane.b32.xlu0 %v204_v6, %s149_s28 }
  0x74   :  { %v38_v9 = vpop.permute.xlu1 %37  ;;  %v34_v10 = vpop.permute.xlu0 %33 }
  0x78   :  { %v40_v11 = vpop.permute.xlu1 %39  ;;  %v36_v12 = vpop.permute.xlu0 %35 }
  0x79   :  { %v57_v33 = vsel %vm53_vm0, %v34_v10, %v40_v11 }
  0x7a   :  { %v66_v41 = vsel %vm63_vm3, %v57_v33, %v173_v1 }
  0x7c   :  { %v44_v14 = vpop.permute.xlu1 %43  ;;  %v42_v15 = vpop.permute.xlu0 %41 }
  0x7d   :  { %v59_v44 = vsel %vm53_vm0, %v38_v9, %v44_v14  ;;  %v58_v48 = vsel %vm53_vm0, %v36_v12, %v42_v15 }
  0x7e   :  { %v72_v62 = vsel %vm63_vm3, %v59_v44, %v168_v0 }
  0x80   :  { %v48_v17 = vpop.permute.xlu1 %47  ;;  %v46_v18 = vpop.permute.xlu0 %45 }
  0x81   :  { %v55_v31 = vsel %vm53_vm0, %v42_v15, %v48_v17  ;;  %v54_v32 = vsel %vm53_vm0, %v40_v11, %v46_v18  ;;  %v60_v34 = vsel %vm53_vm0, %v46_v18, %v34_v10  ;;  %v61_v49 = vsel %vm53_vm0, %v48_v17, %v36_v12 }
  0x82   :  { %v70_v37 = vsel %vm64_vm2, %v55_v31, %v197_v5  ;;  %v67_v38 = vsel %vm64_vm2, %v54_v32, %v180_v2  ;;  %v68_v50 = vsel %vm65_vm5, %v60_v34, %v209_v7  ;;  %v71_v10 = vsel %vm65_vm5, %v61_v49, %v204_v6 }
  0x84   :  { %v76_v24 = vpop.permute.xlu1 %75  ;;  %v50_v25 = vpop.permute.xlu0 %49 }
  0x85   :  { %v56_v45 = vsel %vm53_vm0, %v44_v14, %v50_v25  ;;  %v62_v51 = vsel %vm53_vm0, %v50_v25, %v38_v9  ;;  %v69_v9 = vsel %vm63_vm3, %v58_v48, %v185_v3 }
  0x86   :  { %v73_v58 = vsel %vm64_vm2, %v56_v45, %v192_v4  ;;  %v74_v11 = vsel %vm65_vm5, %v62_v51, %v216_v8 }
  0x88   :  { %v80_v29 = vpop.permute.xlu1 %79  ;;  %v238_v30 = vpop.permute.xlu0 %77 }
  0x8c   :  { %v84_v35 = vpop.permute.xlu1 %83  ;;  %v82_v36 = vpop.permute.xlu0 %81 }
  0x8d   :  { %v98_v39 = vsel %vm93_vm1, %v238_v30, %v84_v35  ;;  %v97_v40 = vsel %vm93_vm1, %v76_v24, %v82_v36 }
  0x8e   :  { %v110_v42 = vsel %vm104_vm4, %v98_v39, %v70_v37  ;;  %v107_v43 = vsel %vm104_vm4, %v97_v40, %v67_v38 }
  0x8f   :  { %v119_v46 = vadd.f32 %v110_v42, %v197_v5  ;;  %v116_v47 = vadd.f32 %v107_v43, %v180_v2 }
  0x90   :  { %v88_v52 = vpop.permute.xlu1 %87  ;;  %v86_v53 = vpop.permute.xlu0 %85 }
  0x91   :  { %v128_v54 = vmul.f32 0.5, %v119_v46  ;;  %v125_v55 = vmul.f32 0.5, %v116_v47  ;;  %v94_v56 = vsel %vm93_vm1, %v82_v36, %v88_v52  ;;  %v100_v57 = vsel %vm93_vm1, %v88_v52, %v76_v24 }
  0x92   :  { %v106_v59 = vsel %vm103_vm6, %v100_v57, %v66_v41  ;;  %v108_v60 = vsel %vm105_vm7, %v94_v56, %v68_v50  ;;  %v99_v61 = vsel %vm93_vm1, %v80_v29, %v86_v53 }
  0x93   :  { %137 = vst [vmem:[%s360_s2 + $0x20] sm:$0xff] %v128_v54  ;;  %134 = vst [vmem:[%s360_s2 + $0x8] sm:$0xff] %v125_v55  ;;  %v115_v63 = vadd.f32 %v106_v59, %v173_v1  ;;  %v117_v2 = vadd.f32 %v108_v60, %v209_v7  ;;  %v113_v5 = vsel %vm104_vm4, %v99_v61, %v73_v58 }
  0x94   :  { %v122_v12 = vadd.f32 %v113_v5, %v192_v4  ;;  %v92_v13 = vpop.permute.xlu1 %91  ;;  %v90_v1 = vpop.permute.xlu0 %89 }
  0x95   :  { %v124_v14 = vmul.f32 0.5, %v115_v63  ;;  %v126_v7 = vmul.f32 0.5, %v117_v2  ;;  %v96_v15 = vsel %vm93_vm1, %v86_v53, %v92_v13  ;;  %v102_v16 = vsel %vm93_vm1, %v92_v13, %v80_v29 }
  0x96   :  { %v131_v17 = vmul.f32 0.5, %v122_v12  ;;  %v112_v18 = vsel %vm103_vm6, %v102_v16, %v72_v62  ;;  %v114_v19 = vsel %vm105_vm7, %v96_v15, %v74_v11  ;;  %v95_v4 = vsel %vm93_vm1, %v84_v35, %v90_v1 }
  0x97   :  { %133 = vst [vmem:[%s360_s2] sm:$0xff] %v124_v14  ;;  %135 = vst [vmem:[%s360_s2 + $0x10] sm:$0xff] %v126_v7  ;;  %v121_v20 = vadd.f32 %v112_v18, %v168_v0  ;;  %v123_v22 = vadd.f32 %v114_v19, %v216_v8  ;;  %v101_v23 = vsel %vm93_vm1, %v90_v1, %v238_v30 }
  0x98   :  { %v111_v24 = vsel %vm105_vm7, %v95_v4, %v71_v10  ;;  %140 = vst [vmem:[%s360_s2 + $0x38] sm:$0xff] %v131_v17  ;;  %v109_v25 = vsel %vm103_vm6, %v101_v23, %v69_v9 }
  0x99   :  { %v120_v26 = vadd.f32 %v111_v24, %v204_v6  ;;  %v130_v29 = vmul.f32 0.5, %v121_v20  ;;  %v132_v0 = vmul.f32 0.5, %v123_v22  ;;  %v118_v8 = vadd.f32 %v109_v25, %v185_v3 }
  0x9b   :  { %v129_v31 = vmul.f32 0.5, %v120_v26  ;;  %139 = vst [vmem:[%s360_s2 + $0x30] sm:$0xff] %v130_v29  ;;  %141 = vst [vmem:[%s360_s2 + $0x40] sm:$0xff] %v132_v0  ;;  %v127_v21 = vmul.f32 0.5, %v118_v8 }
  0x9d   :  { %138 = vst [vmem:[%s360_s2 + $0x28] sm:$0xff] %v129_v31  ;;  %136 = vst [vmem:[%s360_s2 + $0x18] sm:$0xff] %v127_v21 }

</bundles_post_ra>
